<compile_context>
chip_gen: v7x
topology: tpu7x:2x2x1
jax: 0.10.0
libtpu: 0.0.40
codegen_flags: <defaults>
</compile_context>

<pallas_src>
import jax
import jax.numpy as jnp
from jax.experimental import pallas as pl
from jax.experimental.pallas import tpu as pltpu


def _round_up(x, m):
    return (x + m - 1) // m * m


def _pick_tile(n_pad):
    for t in (512, 256, 128):
        if n_pad % t == 0:
            return t
    return 128


# --------------------------- Pallas kernels ----------------------------------

def _linear_kernel(x_ref, w_ref, b_ref, o_ref):
    """o = x @ W + b for one row tile (contraction dim fits in one block)."""
    z = jnp.dot(x_ref[...], w_ref[...],
                preferred_element_type=jnp.float32) + b_ref[...]
    o_ref[...] = z.astype(o_ref.dtype)


def _g_relu_drop_lin_kernel(g_ref, z_ref, mask_ref, w2_ref, b2_ref, p_ref, acc_ref):
    """acc += G[i,k] @ z1[k]; at last k: p[i] = (relu(acc) * mask[i]) @ W2 + b2."""
    k = pl.program_id(1)

    @pl.when(k == 0)
    def _():
        acc_ref[...] = jnp.zeros_like(acc_ref)

    acc_ref[...] += jnp.dot(g_ref[...], z_ref[...],
                            preferred_element_type=jnp.float32)

    @pl.when(k == pl.num_programs(1) - 1)
    def _():
        h = jnp.maximum(acc_ref[...], 0.0) * mask_ref[...]
        p = jnp.dot(h.astype(w2_ref.dtype), w2_ref[...],
                    preferred_element_type=jnp.float32) + b2_ref[...]
        p_ref[...] = p.astype(p_ref.dtype)


def _g_matmul_kernel(g_ref, p_ref, o_ref, acc_ref):
    """acc += G[i,k] @ p[k]; at last k: out[i] = acc."""
    k = pl.program_id(1)

    @pl.when(k == 0)
    def _():
        acc_ref[...] = jnp.zeros_like(acc_ref)

    acc_ref[...] += jnp.dot(g_ref[...], p_ref[...],
                            preferred_element_type=jnp.float32)

    @pl.when(k == pl.num_programs(1) - 1)
    def _():
        o_ref[...] = acc_ref[...].astype(o_ref.dtype)


# ------------------------------ wrapper ---------------------------------------

def dropout_mask(key, shape, p, training=True):
    """Keep/scale mask with F.dropout semantics: values in {0, 1/(1-p)}."""
    if not training or p <= 0.0:
        return jnp.ones(shape, jnp.float32)
    if p >= 1.0:  # guard divide-by-zero
        return jnp.zeros(shape, jnp.float32)
    keep = jax.random.bernoulli(key, 1.0 - p, shape)
    return keep.astype(jnp.float32) / (1.0 - p)


def hgnn_forward(x, G, w1, b1, w2, b2, drop_mask):
    """x:(N,in_ch)  G:(N,N)  w1:(in_ch,n_hid)  w2:(n_hid,n_class)  mask:(N,n_hid)."""
    N, in_ch = x.shape
    n_hid = w1.shape[1]
    n_class = w2.shape[1]

    n_hid_p = _round_up(n_hid, 128)    # lane-dense hidden dim
    n_cls_p = _round_up(n_class, 128)  # lane-dense output dim
    n_pad = _round_up(N, 128)
    tile = _pick_tile(n_pad)

    # Pad + cast: bf16 for everything that streams / feeds the MXU, f32 biases.
    x_p = jnp.zeros((n_pad, in_ch), jnp.bfloat16).at[:N, :].set(x.astype(jnp.bfloat16))
    g_p = jnp.zeros((n_pad, n_pad), jnp.bfloat16).at[:N, :N].set(G.astype(jnp.bfloat16))
    w1_p = jnp.zeros((in_ch, n_hid_p), jnp.bfloat16).at[:, :n_hid].set(w1.astype(jnp.bfloat16))
    b1_p = jnp.zeros((1, n_hid_p), jnp.float32).at[:, :n_hid].set(b1.reshape(1, -1))
    w2_p = jnp.zeros((n_hid_p, n_cls_p), jnp.bfloat16).at[:n_hid, :n_class].set(w2.astype(jnp.bfloat16))
    b2_p = jnp.zeros((1, n_cls_p), jnp.float32).at[:, :n_class].set(b2.reshape(1, -1))
    m_p = jnp.zeros((n_pad, n_hid_p), jnp.bfloat16).at[:N, :n_hid].set(drop_mask.astype(jnp.bfloat16))

    cparams = pltpu.CompilerParams(
        dimension_semantics=("parallel", "arbitrary"),
        # Tiles (double-buffered bf16 G tile + small resident weights + f32 acc)
        # need only a few MiB; 32 MiB is safely below physical VMEM on v5e/v6e/v7x.
        vmem_limit_bytes=32 * 1024 * 1024,
    )
    cparams_1d = pltpu.CompilerParams(
        dimension_semantics=("parallel",),
        vmem_limit_bytes=32 * 1024 * 1024,
    )

    # ---- pass 0: z1 = x @ W1 + b1  (computed exactly once) --------------------
    z1 = pl.pallas_call(
        _linear_kernel,
        out_shape=jax.ShapeDtypeStruct((n_pad, n_hid_p), jnp.bfloat16),
        grid=(n_pad // tile,),
        in_specs=[
            pl.BlockSpec((tile, in_ch), lambda i: (i, 0)),      # x rows
            pl.BlockSpec((in_ch, n_hid_p), lambda i: (0, 0)),   # W1 (resident)
            pl.BlockSpec((1, n_hid_p), lambda i: (0, 0)),       # b1 (resident)
        ],
        out_specs=pl.BlockSpec((tile, n_hid_p), lambda i: (i, 0)),
        compiler_params=cparams_1d,
    )(x_p, w1_p, b1_p)

    # ---- pass 1: p = (relu(G @ z1) * mask) @ W2 + b2  (fused finalize) --------
    grid = (n_pad // tile, n_pad // tile)
    p = pl.pallas_call(
        _g_relu_drop_lin_kernel,
        out_shape=jax.ShapeDtypeStruct((n_pad, n_cls_p), jnp.bfloat16),
        grid=grid,
        in_specs=[
            pl.BlockSpec((tile, tile), lambda i, k: (i, k)),      # G row/col tile
            pl.BlockSpec((tile, n_hid_p), lambda i, k: (k, 0)),   # z1 rows (reduction)
            pl.BlockSpec((tile, n_hid_p), lambda i, k: (i, 0)),   # dropout mask rows
            pl.BlockSpec((n_hid_p, n_cls_p), lambda i, k: (0, 0)),# W2 (resident)
            pl.BlockSpec((1, n_cls_p), lambda i, k: (0, 0)),      # b2 (resident)
        ],
        out_specs=pl.BlockSpec((tile, n_cls_p), lambda i, k: (i, 0)),
        scratch_shapes=[pltpu.VMEM((tile, n_hid_p), jnp.float32)],
        compiler_params=cparams,
    )(g_p, z1, m_p, w2_p, b2_p)

    # ---- pass 2: out = G @ p ---------------------------------------------------
    out_p = pl.pallas_call(
        _g_matmul_kernel,
        out_shape=jax.ShapeDtypeStruct((n_pad, n_cls_p), jnp.float32),
        grid=grid,
        in_specs=[
            pl.BlockSpec((tile, tile), lambda i, k: (i, k)),      # G row/col tile
            pl.BlockSpec((tile, n_cls_p), lambda i, k: (k, 0)),   # p rows (reduction)
        ],
        out_specs=pl.BlockSpec((tile, n_cls_p), lambda i, k: (i, 0)),
        scratch_shapes=[pltpu.VMEM((tile, n_cls_p), jnp.float32)],
        compiler_params=cparams,
    )(g_p, p)

    return out_p[:N, :n_class]


def init_params(key, in_ch, n_hid, n_class):
    """Deterministic synthetic init mimicking nn.Linear's uniform ranges."""
    k1, k2, k3, k4 = jax.random.split(key, 4)
    bound1 = 1.0 / jnp.sqrt(in_ch)
    bound2 = 1.0 / jnp.sqrt(n_hid)
    w1 = jax.random.uniform(k1, (in_ch, n_hid), jnp.float32, -bound1, bound1)
    b1 = jax.random.uniform(k2, (n_hid,), jnp.float32, -bound1, bound1)
    w2 = jax.random.uniform(k3, (n_hid, n_class), jnp.float32, -bound2, bound2)
    b2 = jax.random.uniform(k4, (n_class,), jnp.float32, -bound2, bound2)
    return w1, b1, w2, b2


if __name__ == "__main__":
    # Small shapes: N nodes, in_ch features, n_hid hidden, n_class outputs.
    N, in_ch, n_hid, n_class = 32, 16, 32, 8
    key = jax.random.PRNGKey(0)
    kx, kg, kp, kd = jax.random.split(key, 4)

    x = jax.random.normal(kx, (N, in_ch), jnp.float32)
    # Dense symmetric "hypergraph Laplacian-like" operator G (N x N).
    G = jax.random.normal(kg, (N, N), jnp.float32) * 0.1
    G = 0.5 * (G + G.T)

    w1, b1, w2, b2 = init_params(kp, in_ch, n_hid, n_class)
    mask = dropout_mask(kd, (N, n_hid), p=0.5, training=True)

    out = hgnn_forward(x, G, w1, b1, w2, b2, mask)
    jax.block_until_ready(out)

    # Pure-JAX reference with the same dropout mask (loose tol for bf16 streams).
    h_ref = jnp.maximum(G @ (x @ w1 + b1[None, :]), 0.0) * mask
    ref = G @ (h_ref @ w2 + b2[None, :])

    assert out.shape == (N, n_class)
    assert jnp.all(jnp.isfinite(out))
    assert jnp.allclose(out, ref, atol=1e-1, rtol=1e-1), float(jnp.max(jnp.abs(out - ref)))
    print("KERNEL_OK")
</pallas_src>

<mosaic_0001>
module attributes {stable_mosaic.version = 11 : i64} {
  func.func @_linear_kernel(%arg0: i32, %arg1: memref<128x16xbf16, #tpu.memory_space<vmem>>, %arg2: memref<16x128xbf16, #tpu.memory_space<vmem>>, %arg3: memref<1x128xf32, #tpu.memory_space<vmem>>, %arg4: memref<128x128xbf16, #tpu.memory_space<vmem>>) attributes {dimension_semantics = [#tpu.dimension_semantics<parallel>], iteration_bounds = array<i64: 1>, scalar_prefetch = 0 : i64, scratch_operands = 0 : i64, tpu.core_type = #tpu.core_type<tc>, window_params = [{transform_indices = @transform_0, window_bounds = array<i64: 128, 16>}, {pipeline_mode = #tpu.pipeline_mode<synchronous>, transform_indices = @transform_1, window_bounds = array<i64: 16, 128>}, {pipeline_mode = #tpu.pipeline_mode<synchronous>, transform_indices = @transform_2, window_bounds = array<i64: 1, 128>}, {transform_indices = @transform_3, window_bounds = array<i64: 128, 128>}]} {
    %c0 = arith.constant 0 : index
    %c0_0 = arith.constant 0 : index
    %0 = vector.load %arg1[%c0, %c0_0] : memref<128x16xbf16, #tpu.memory_space<vmem>>, vector<128x16xbf16>
    %c0_1 = arith.constant 0 : index
    %c0_2 = arith.constant 0 : index
    %1 = vector.load %arg2[%c0_1, %c0_2] : memref<16x128xbf16, #tpu.memory_space<vmem>>, vector<16x128xbf16>
    %cst = arith.constant dense<0.000000e+00> : vector<128x128xf32>
    %2 = tpu.matmul %0, %1, %cst {dimension_numbers = #tpu.dot_dimension_numbers<[1], [0], [0], [1], [0, 0, 1, 1], [], []>} : vector<128x16xbf16>, vector<16x128xbf16>, vector<128x128xf32> -> vector<128x128xf32>
    %c0_3 = arith.constant 0 : index
    %c0_4 = arith.constant 0 : index
    %3 = vector.load %arg3[%c0_3, %c0_4] : memref<1x128xf32, #tpu.memory_space<vmem>>, vector<1x128xf32>
    %4 = vector.broadcast %3 : vector<1x128xf32> to vector<128x128xf32>
    %5 = arith.addf %2, %4 : vector<128x128xf32>
    %6 = arith.truncf %5 : vector<128x128xf32> to vector<128x128xbf16>
    %c0_5 = arith.constant 0 : index
    %c0_6 = arith.constant 0 : index
    %7 = vector.load %arg4[%c0_5, %c0_6] : memref<128x128xbf16, #tpu.memory_space<vmem>>, vector<128x128xbf16>
    tpu.vector_store %arg4[%c0_5, %c0_6], %6 {strides = array<i32>} : memref<128x128xbf16, #tpu.memory_space<vmem>>, vector<128x128xbf16>,
    return
  }
  func.func @transform_0(%arg0: i32) -> (i32, i32) {
    %c0_i32 = arith.constant 0 : i32
    %c0_i32_0 = arith.constant 0 : i32
    return %arg0, %c0_i32 : i32, i32
  }
  func.func @transform_1(%arg0: i32) -> (i32, i32) {
    %c0_i32 = arith.constant 0 : i32
    %c0_i32_0 = arith.constant 0 : i32
    %c0_i32_1 = arith.constant 0 : i32
    return %c0_i32, %c0_i32_0 : i32, i32
  }
  func.func @transform_2(%arg0: i32) -> (i32, i32) {
    %c0_i32 = arith.constant 0 : i32
    %c0_i32_0 = arith.constant 0 : i32
    %c0_i32_1 = arith.constant 0 : i32
    return %c0_i32, %c0_i32_0 : i32, i32
  }
  func.func @transform_3(%arg0: i32) -> (i32, i32) {
    %c0_i32 = arith.constant 0 : i32
    %c0_i32_0 = arith.constant 0 : i32
    return %arg0, %c0_i32 : i32, i32
  }
}

</mosaic_0001>

<bundles_post_ra>
// kernel: tpu_custom_call.1
= control target key start
LH: loop header
LB: loop body
LE: loop exit
PB: predicated region body
PF: predicated region fallthrough
CT: control target
= control target key end

     0   :  { %vm87_vm0 = vcmask 130048   ;;  %s540_s0 = inlined_call_operand.vmem [shape: bf16[128,16], index: 0, kind: input, shape index: {}]   ;;  %s541_s1 = inlined_call_operand.vmem [shape: bf16[16,128], index: 1, kind: input, shape index: {}]   ;;  %s542_s2 = inlined_call_operand.vmem [shape: f32[1,128], index: 2, kind: input, shape index: {}]   ;;  %s543_s3 = inlined_call_operand.hbm [shape: bf16[128,128], index: 3, kind: output, shape index: {}]  }
   0x1   :  { %v434_v0 = vld [vmem:[%s541_s1] sm:$0xff]   ;;  %v437_v3 = vld [vmem:[%s540_s0 + $0x8] sm:$0xff]   ;;  %v439_v5 = vld [vmem:[%s540_s0 + $0x10] sm:$0xff]  }
   0x2   :  { %v435_v1 = vld [vmem:[%s540_s0] sm:$0xff]   ;;  %411 = vmatprep.subr.bf16.mxu0 %v434_v0  ;;  %429 = vmatprep.subr.bf16.mxu1 %v434_v0  ;;  %v438_v4 = vld [vmem:[%s540_s0 + $0x28] sm:$0xff]   ;;  %v440_v6 = vld [vmem:[%s540_s0 + $0x30] sm:$0xff]  }
   0x3   :  { %v436_v2 = vld [vmem:[%s540_s0 + $0x20] sm:$0xff]   ;;  %412 = vmatpush3.bf16.msra.mxu0 %v434_v0  ;;  %430 = vmatpush3.bf16.msra.mxu1 %v434_v0 }
   0x4   :  { %413 = vmatprep.mubr.msk.bf16.mxu0 %vm87_vm0, %v435_v1  ;;  %421 = vmatprep.mubr.msk.bf16.mxu1 %vm87_vm0, %v436_v2 }
   0x6   :  { %414 = vmatmul.mubr.msk.bf16.vlgmr.msra.gmra.mrb[0].mxu0 %vm87_vm0, %v437_v3  ;;  %422 = vmatmul.mubr.msk.bf16.vlgmr.msra.gmra.mrb[0].mxu1 %vm87_vm0, %v438_v4 }
   0x7   :  { %417 = vmatprep.mubr.msk.bf16.mxu0 %vm87_vm0, %v439_v5  ;;  %425 = vmatprep.mubr.msk.bf16.mxu1 %vm87_vm0, %v440_v6 }
   0x8   :  { %8 = vsyncpa [#allocation3], 0  ;;  %v441_v7 = vld [vmem:[%s540_s0 + $0x18] sm:$0xff]   ;;  %v305_v10 = vld [vmem:[%s542_s2] ss:$0 sm:$0xff] }
   0x9   :  { %v442_v8 = vld [vmem:[%s540_s0 + $0x38] sm:$0xff]   ;;  %s467_s0 = smov [#allocation2]  }
   0xa   :  { %s294_s2 = sshll.u32 %s467_s0, 4  ;;  %s295_s2 = int_to_ptr.vmem [resolvable:$true] %s294_s2 }
   0xb   :  { %s443_s4 = scalar_lea.vmem %s295_s2, 1024  ;;  %p448_p1 = scmp.lt.s32.totalorder %s295_s2, %s295_s2 }
   0xc   :  { %p444_p0 = scmp.ne.s32.totalorder %s295_s2, %s443_s4  ;;  %p449_p2 = scmp.lt.s32.totalorder %s443_s4, %s443_s4 }
   0xe   :  { %418 = vmatmul.mubr.msk.bf16.gmra.mrb[4].mxu0 %vm87_vm0, %v441_v7  ;;  %426 = vmatmul.mubr.msk.bf16.gmra.mrb[4].mxu1 %vm87_vm0, %v442_v8  ;;  %p450_p3 = por %p449_p2, %p448_p1 }
  0x10   :  { %p451_p4 = pnand %p450_p3, %p444_p0 }
  0xd9   :  { %v415_v9 = vpop.f32.mrb[0].mxu0  ;;  %v423_v11 = vpop.f32.mrb[0].mxu1 }
  0xda   :  { %v146_v12 = vpop.f32.mrb[1].mxu0  ;;  %v178_v13 = vpop.f32.mrb[1].mxu1  ;;  %v155_v16 = vadd.f32 %v415_v9, %v305_v10  ;;  %v187_v17 = vadd.f32 %v423_v11, %v305_v10 }
  0xdb   :  { %v416_v14 = vpop.f32.mrb[2].mxu0  ;;  %v424_v15 = vpop.f32.mrb[2].mxu1  ;;  %v147_v22 = vadd.f32 %v305_v10, %v146_v12  ;;  %v179_v23 = vadd.f32 %v305_v10, %v178_v13 }
  0xdc   :  { %v158_v18 = vadd.f32 %v416_v14, %v305_v10  ;;  %v190_v19 = vadd.f32 %v424_v15, %v305_v10  ;;  %v149_v20 = vpop.f32.mrb[3].mxu0  ;;  %v181_v21 = vpop.f32.mrb[3].mxu1 }
  0xdd   :  { %v150_v24 = vadd.f32 %v305_v10, %v149_v20  ;;  %v182_v25 = vadd.f32 %v305_v10, %v181_v21 }
  0xde   :  { %v363_v26 = vpack.c.bf16 %v158_v18, %v155_v16  ;;  %v383_v27 = vpack.c.bf16 %v190_v19, %v187_v17 }
  0xdf   :  { %v358_v28 = vpack.c.bf16 %v150_v24, %v147_v22  ;;  %v378_v29 = vpack.c.bf16 %v182_v25, %v179_v23 }
  0xe0   :  { %395 = vst [vmem:[#allocation2 + $0x8] sm:$0xff] %v363_v26   ;;  %399 = vst [vmem:[#allocation2 + $0x28] sm:$0xff] %v383_v27  }
  0xe1   :  { %359 = vst [vmem:[#allocation2] sm:$0xff] %v358_v28   ;;  %398 = vst [vmem:[#allocation2 + $0x20] sm:$0xff] %v378_v29   ;;  %v419_v30 = vpop.f32.mrb[4].mxu0  ;;  %v427_v31 = vpop.f32.mrb[4].mxu1 }
  0xe2   :  { %v162_v32 = vpop.f32.mrb[5].mxu0  ;;  %v194_v33 = vpop.f32.mrb[5].mxu1  ;;  %v171_v36 = vadd.f32 %v419_v30, %v305_v10  ;;  %v203_v37 = vadd.f32 %v427_v31, %v305_v10 }
  0xe3   :  { %v420_v34 = vpop.f32.mrb[6].mxu0  ;;  %v428_v35 = vpop.f32.mrb[6].mxu1  ;;  %v163_v42 = vadd.f32 %v305_v10, %v162_v32  ;;  %v195_v43 = vadd.f32 %v305_v10, %v194_v33 }
  0xe4   :  { %v174_v38 = vadd.f32 %v420_v34, %v305_v10  ;;  %v206_v39 = vadd.f32 %v428_v35, %v305_v10  ;;  %v165_v40 = vpop.f32.mrb[7].mxu0  ;;  %v197_v41 = vpop.f32.mrb[7].mxu1 }
  0xe5   :  { %v166_v44 = vadd.f32 %v305_v10, %v165_v40  ;;  %v198_v45 = vadd.f32 %v305_v10, %v197_v41 }
  0xe6   :  { %v373_v46 = vpack.c.bf16 %v174_v38, %v171_v36  ;;  %v393_v47 = vpack.c.bf16 %v206_v39, %v203_v37 }
  0xe7   :  { %v368_v48 = vpack.c.bf16 %v166_v44, %v163_v42  ;;  %v388_v49 = vpack.c.bf16 %v198_v45, %v195_v43 }
  0xe8   :  { %397 = vst [vmem:[#allocation2 + $0x18] sm:$0xff] %v373_v46   ;;  %401 = vst [vmem:[#allocation2 + $0x38] sm:$0xff] %v393_v47  }
  0xe9   :  { %396 = vst [vmem:[#allocation2 + $0x10] sm:$0xff] %v368_v48   ;;  %400 = vst [vmem:[#allocation2 + $0x30] sm:$0xff] %v388_v49  }
  0xea   :  { %454 = shalt.err (!%p451_p4)
}
  0xeb   :  { %s455_s7 = scalar_lea.hbm %s543_s3, 1024 }
  0xec   :  { %p456_p5 = scmp.ne.s32.totalorder %s543_s3, %s455_s7  ;;  %p459_p6 = scmp.lt.u32.totalorder %s455_s7, %s543_s3 }
  0xee   :  { %p461_p7 = pnand %p459_p6, %p456_p5 }
  0xf0   :  { %464 = shalt.err (!%p461_p7)
}
  0xf1   :  { %s468_s12 = smov 64   ;;  %s469_s13 = smov 4  }
  0xf2   :  { %300 = dma.vmem_to_hbm [thread:$0]  %s295_s2, 1024, %s543_s3, [#allocation3], %s468_s12, %s468_s12, %s469_s13  }
  0xf3   :  { %465 = dma.done.wait [#allocation3], 1024  }
  0xf4   :  { %466 = vsyncadd [#allocation3], 4294966272 }
  0xf5   :  { %304 = vsyncpa [#allocation3], 1 }

</bundles_post_ra>
